<compile_context>
chip_gen: v7x
topology: tpu7x:2x2x1
jax: 0.10.0
libtpu: 0.0.40
codegen_flags: <defaults>
</compile_context>

<pallas_src>
import jax
import jax.numpy as jnp
from jax.experimental import pallas as pl
from jax.experimental.pallas import tpu as pltpu


_TARGET_TILE_BYTES = 8 << 20      # per feature DMA buffer (review: 4-8 MiB)
_SMALL_C_MAX = 16                 # <= this -> VPU select-gather, else MXU one-hot
_RESIDENT_LABEL_BYTES = 1 << 20   # keep labels VMEM-resident up to this footprint


def _packed_sublanes(dtype):
    """Native sublane packing: 8 rows for 4-byte, 16 for 2-byte, 32 for 1-byte."""
    return max(8, 32 // jnp.dtype(dtype).itemsize)


def _block_vmem_bytes(rows, cols, dtype):
    """VMEM bytes of one (rows, cols) block after (sublane, 128)-tile padding."""
    itemsize = jnp.dtype(dtype).itemsize
    sub = _packed_sublanes(dtype)
    r = -(-rows // sub) * sub
    c = -(-cols // 128) * 128
    return r * c * itemsize


def _choose_tile_b(B, D, dtype, target_bytes=_TARGET_TILE_BYTES):
    """Rows per grid step: ~target_bytes per DMA buffer, sublane-aligned."""
    sub = _packed_sublanes(dtype)
    if B <= sub:
        return B                                   # single full block
    itemsize = jnp.dtype(dtype).itemsize
    t = target_bytes // max(1, D * itemsize)
    t = min(t, B)
    return max(sub, (t // sub) * sub)


def prototype_loss(feature_prototypes, prototypes, labels, lambda_reg=0.15):
    """Pallas implementation of PrototypeLoss.forward (returns a scalar)."""
    B, D = feature_prototypes.shape
    C, D2 = prototypes.shape
    assert D == D2, "feature and prototype dims must match"

    f_dtype = feature_prototypes.dtype
    tile_b = _choose_tile_b(B, D, f_dtype)
    num_tiles = pl.cdiv(B, tile_b)
    b_pad = num_tiles * tile_b

    # Labels as a padded [b_pad, 1] int32 column (padded rows are masked out).
    lbl2d = jnp.pad(labels.astype(jnp.int32), (0, b_pad - B)).reshape(b_pad, 1)

    small_c = C <= _SMALL_C_MAX
    has_partial_tile = (B % tile_b) != 0
    labels_resident = _block_vmem_bytes(b_pad, 1, jnp.int32) <= _RESIDENT_LABEL_BYTES

    def kernel(f_ref, lbl_ref, proto_ref, o_ref):
        i = pl.program_id(0)

        # Cast AFTER the DMA (native-dtype bytes over HBM; VPU cast is cheap).
        f = f_ref[...].astype(jnp.float32)                        # [tile_b, D]

        if labels_resident:
            start = pl.multiple_of(i * tile_b, tile_b)
            lbl = lbl_ref[pl.ds(start, tile_b), :]                # [tile_b, 1]
        else:
            lbl = lbl_ref[...]                                    # [tile_b, 1]

        # Fused gather prototypes[labels].
        if small_c:
            # Small class count: C-step select-accumulate on the VPU; avoids a
            # contraction padded to 128/256 lanes on the MXU.
            proto = proto_ref[...].astype(jnp.float32)            # [C, D]
            bp = jnp.zeros((tile_b, D), jnp.float32)
            for c in range(C):
                bp = bp + jnp.where(lbl == c, proto[c:c + 1, :], 0.0)
        else:
            # Large class count: one-hot (VPU compare) @ prototypes (MXU).
            oh_dtype = (jnp.bfloat16 if proto_ref.dtype == jnp.bfloat16
                        else jnp.float32)
            class_ids = jax.lax.broadcasted_iota(jnp.int32, (tile_b, C), 1)
            one_hot = (lbl == class_ids).astype(oh_dtype)         # [tile_b, C]
            proto = proto_ref[...].astype(oh_dtype)               # exact for 0/1 weights
            bp = jnp.dot(one_hot, proto, preferred_element_type=jnp.float32)

        # Row-wise L2 distance; keep 2-D (keepdims) shapes for clean layouts.
        diff = f - bp
        l2 = jnp.sqrt(jnp.sum(diff * diff, axis=1, keepdims=True))   # [tile_b, 1]

        if has_partial_tile:
            # Only traced when B % tile_b != 0.  jnp.where (select) so NaN/Inf
            # from stale padded rows cannot propagate into the partial sum.
            row = jax.lax.broadcasted_iota(jnp.int32, (tile_b, 1), 0) + i * tile_b
            l2 = jnp.where(row < B, l2, 0.0)

        partial = jnp.sum(l2, axis=0, keepdims=True)              # [1, 1]
        # One aligned (8,128) output tile per grid step -> unmasked stores.
        o_ref[...] = jnp.broadcast_to(partial, (8, 128))

    # Explicit VMEM budget (conservative: double-buffer everything) so larger
    # tiles survive v5e's 16 MiB scoped default and v7x's 64 MiB physical VMEM.
    vmem_needed = (2 * _block_vmem_bytes(tile_b, D, f_dtype)
                   + 2 * _block_vmem_bytes(C, D, prototypes.dtype)
                   + 2 * _block_vmem_bytes(b_pad if labels_resident else tile_b,
                                           1, jnp.int32)
                   + 2 * _block_vmem_bytes(8, 128, jnp.float32))
    vmem_limit = int(min(max(vmem_needed * 3 // 2, 20 << 20), 48 << 20))

    def build(single_buffer_resident):
        resident_kw = ({"pipeline_mode": pl.Buffered(1)}
                       if single_buffer_resident else {})
        if labels_resident:
            lbl_spec = pl.BlockSpec((b_pad, 1), lambda i: (0, 0), **resident_kw)
        else:
            lbl_spec = pl.BlockSpec((tile_b, 1), lambda i: (i, 0))
        return pl.pallas_call(
            kernel,
            out_shape=jax.ShapeDtypeStruct((num_tiles * 8, 128), jnp.float32),
            grid=(num_tiles,),
            in_specs=[
                pl.BlockSpec((tile_b, D), lambda i: (i, 0)),            # features
                lbl_spec,                                               # labels
                pl.BlockSpec((C, D), lambda i: (0, 0), **resident_kw),  # prototypes
            ],
            out_specs=pl.BlockSpec((8, 128), lambda i: (i, 0)),
            compiler_params=pltpu.CompilerParams(
                dimension_semantics=("parallel",),   # independent tiles -> megacore
                vmem_limit_bytes=vmem_limit),
        )

    try:
        # Constant-index (resident) blocks single-buffered -> halves their VMEM.
        out = build(True)(feature_prototypes, lbl2d, prototypes)
    except Exception:
        # Fallback if this JAX build rejects pipeline_mode=pl.Buffered(1); the
        # VMEM budget above already assumes double buffering, so this is safe.
        out = build(False)(feature_prototypes, lbl2d, prototypes)

    partials = out[::8, 0]                      # one partial L2 sum per tile
    return (lambda_reg / B) * jnp.sum(partials)


if __name__ == "__main__":
    # Deterministic small-shape example consistent with the module:
    #   B (batch) = 20 (deliberately NOT a multiple of the tile, to exercise
    #   the multi-tile parallel path and the partial-tile mask),
    #   num_classes C = 5, feature dim D = 32.
    key = jax.random.PRNGKey(0)
    k1, k2, k3 = jax.random.split(key, 3)

    B, C, D = 20, 5, 32
    feature_prototypes = jax.random.normal(k1, (B, D), dtype=jnp.float32)
    prototypes = jax.random.normal(k2, (C, D), dtype=jnp.float32)
    labels = jax.random.randint(k3, (B,), 0, C, dtype=jnp.int32)

    loss = prototype_loss(feature_prototypes, prototypes, labels, lambda_reg=0.15)
    loss = jax.block_until_ready(loss)

    # Pure-JAX reference (same math as the PyTorch module).
    ref = 0.15 * jnp.mean(
        jnp.linalg.norm(feature_prototypes - prototypes[labels], axis=1)
    )
    assert jnp.allclose(loss, ref, rtol=1e-5, atol=1e-6), (loss, ref)

    print("KERNEL_OK")
</pallas_src>

<mosaic_0001>
module attributes {stable_mosaic.version = 11 : i64} {
  func.func @kernel(%arg0: i32, %arg1: memref<16x32xf32, #tpu.memory_space<vmem>>, %arg2: memref<32x1xi32, #tpu.memory_space<vmem>>, %arg3: memref<5x32xf32, #tpu.memory_space<vmem>>, %arg4: memref<8x128xf32, #tpu.memory_space<vmem>>) attributes {dimension_semantics = [#tpu.dimension_semantics<parallel>], iteration_bounds = array<i64: 2>, scalar_prefetch = 0 : i64, scratch_operands = 0 : i64, tpu.core_type = #tpu.core_type<tc>, window_params = [{transform_indices = @transform_0, window_bounds = array<i64: 16, 32>}, {pipeline_mode = #tpu.pipeline_mode<synchronous>, transform_indices = @transform_1, window_bounds = array<i64: 32, 1>}, {pipeline_mode = #tpu.pipeline_mode<synchronous>, transform_indices = @transform_2, window_bounds = array<i64: 5, 32>}, {transform_indices = @transform_3, window_bounds = array<i64: 8, 128>}]} {
    %c0 = arith.constant 0 : index
    %c0_0 = arith.constant 0 : index
    %0 = vector.load %arg1[%c0, %c0_0] : memref<16x32xf32, #tpu.memory_space<vmem>>, vector<16x32xf32>
    %c16_i32 = arith.constant 16 : i32
    %1 = arith.muli %arg0, %c16_i32 : i32
    %2 = tpu.assume_multiple %1, 16 : i32
    %3 = arith.index_cast %2 : i32 to index
    %c0_1 = arith.constant 0 : index
    %4 = vector.load %arg2[%3, %c0_1] : memref<32x1xi32, #tpu.memory_space<vmem>>, vector<16x1xi32>
    %c0_2 = arith.constant 0 : index
    %c0_3 = arith.constant 0 : index
    %5 = vector.load %arg3[%c0_2, %c0_3] : memref<5x32xf32, #tpu.memory_space<vmem>>, vector<5x32xf32>
    %cst = arith.constant 0.000000e+00 : f32
    %6 = vector.broadcast %cst : f32 to vector<16x32xf32>
    %c0_i32 = arith.constant 0 : i32
    %7 = vector.broadcast %c0_i32 : i32 to vector<16x1xi32>
    %8 = arith.cmpi eq, %4, %7 : vector<16x1xi32>
    %9 = vector.extract_strided_slice %5 {offsets = [0, 0], sizes = [1, 32], strides = [1, 1]} : vector<5x32xf32> to vector<1x32xf32>
    %cst_4 = arith.constant 0.000000e+00 : f32
    %10 = vector.shape_cast %8 : vector<16x1xi1> to vector<16x1xi1>
    %11 = vector.broadcast %10 : vector<16x1xi1> to vector<16x32xi1>
    %12 = vector.shape_cast %9 : vector<1x32xf32> to vector<1x32xf32>
    %13 = vector.broadcast %12 : vector<1x32xf32> to vector<16x32xf32>
    %14 = vector.broadcast %cst_4 : f32 to vector<16x32xf32>
    %15 = arith.select %11, %13, %14 : vector<16x32xi1>, vector<16x32xf32>
    %16 = arith.addf %6, %15 : vector<16x32xf32>
    %c1_i32 = arith.constant 1 : i32
    %17 = vector.broadcast %c1_i32 : i32 to vector<16x1xi32>
    %18 = arith.cmpi eq, %4, %17 : vector<16x1xi32>
    %19 = vector.extract_strided_slice %5 {offsets = [1, 0], sizes = [1, 32], strides = [1, 1]} : vector<5x32xf32> to vector<1x32xf32>
    %cst_5 = arith.constant 0.000000e+00 : f32
    %20 = vector.shape_cast %18 : vector<16x1xi1> to vector<16x1xi1>
    %21 = vector.broadcast %20 : vector<16x1xi1> to vector<16x32xi1>
    %22 = vector.shape_cast %19 : vector<1x32xf32> to vector<1x32xf32>
    %23 = vector.broadcast %22 : vector<1x32xf32> to vector<16x32xf32>
    %24 = vector.broadcast %cst_5 : f32 to vector<16x32xf32>
    %25 = arith.select %21, %23, %24 : vector<16x32xi1>, vector<16x32xf32>
    %26 = arith.addf %16, %25 : vector<16x32xf32>
    %c2_i32 = arith.constant 2 : i32
    %27 = vector.broadcast %c2_i32 : i32 to vector<16x1xi32>
    %28 = arith.cmpi eq, %4, %27 : vector<16x1xi32>
    %29 = vector.extract_strided_slice %5 {offsets = [2, 0], sizes = [1, 32], strides = [1, 1]} : vector<5x32xf32> to vector<1x32xf32>
    %cst_6 = arith.constant 0.000000e+00 : f32
    %30 = vector.shape_cast %28 : vector<16x1xi1> to vector<16x1xi1>
    %31 = vector.broadcast %30 : vector<16x1xi1> to vector<16x32xi1>
    %32 = vector.shape_cast %29 : vector<1x32xf32> to vector<1x32xf32>
    %33 = vector.broadcast %32 : vector<1x32xf32> to vector<16x32xf32>
    %34 = vector.broadcast %cst_6 : f32 to vector<16x32xf32>
    %35 = arith.select %31, %33, %34 : vector<16x32xi1>, vector<16x32xf32>
    %36 = arith.addf %26, %35 : vector<16x32xf32>
    %c3_i32 = arith.constant 3 : i32
    %37 = vector.broadcast %c3_i32 : i32 to vector<16x1xi32>
    %38 = arith.cmpi eq, %4, %37 : vector<16x1xi32>
    %39 = vector.extract_strided_slice %5 {offsets = [3, 0], sizes = [1, 32], strides = [1, 1]} : vector<5x32xf32> to vector<1x32xf32>
    %cst_7 = arith.constant 0.000000e+00 : f32
    %40 = vector.shape_cast %38 : vector<16x1xi1> to vector<16x1xi1>
    %41 = vector.broadcast %40 : vector<16x1xi1> to vector<16x32xi1>
    %42 = vector.shape_cast %39 : vector<1x32xf32> to vector<1x32xf32>
    %43 = vector.broadcast %42 : vector<1x32xf32> to vector<16x32xf32>
    %44 = vector.broadcast %cst_7 : f32 to vector<16x32xf32>
    %45 = arith.select %41, %43, %44 : vector<16x32xi1>, vector<16x32xf32>
    %46 = arith.addf %36, %45 : vector<16x32xf32>
    %c4_i32 = arith.constant 4 : i32
    %47 = vector.broadcast %c4_i32 : i32 to vector<16x1xi32>
    %48 = arith.cmpi eq, %4, %47 : vector<16x1xi32>
    %49 = vector.extract_strided_slice %5 {offsets = [4, 0], sizes = [1, 32], strides = [1, 1]} : vector<5x32xf32> to vector<1x32xf32>
    %cst_8 = arith.constant 0.000000e+00 : f32
    %50 = vector.shape_cast %48 : vector<16x1xi1> to vector<16x1xi1>
    %51 = vector.broadcast %50 : vector<16x1xi1> to vector<16x32xi1>
    %52 = vector.shape_cast %49 : vector<1x32xf32> to vector<1x32xf32>
    %53 = vector.broadcast %52 : vector<1x32xf32> to vector<16x32xf32>
    %54 = vector.broadcast %cst_8 : f32 to vector<16x32xf32>
    %55 = arith.select %51, %53, %54 : vector<16x32xi1>, vector<16x32xf32>
    %56 = arith.addf %46, %55 : vector<16x32xf32>
    %57 = arith.subf %0, %56 : vector<16x32xf32>
    %58 = arith.mulf %57, %57 : vector<16x32xf32>
    %cst_9 = arith.constant dense<0.000000e+00> : vector<16xf32>
    %59 = vector.multi_reduction <add>, %58, %cst_9 [1] : vector<16x32xf32> to vector<16xf32>
    %60 = vector.shape_cast %59 : vector<16xf32> to vector<16x1xf32>
    %61 = math.sqrt %60 : vector<16x1xf32>
    %62 = tpu.iota {dimensions = array<i32: 0>} : vector<16x1xi32>
    %c16_i32_10 = arith.constant 16 : i32
    %63 = arith.muli %arg0, %c16_i32_10 : i32
    %64 = vector.broadcast %63 : i32 to vector<16x1xi32>
    %65 = arith.addi %62, %64 : vector<16x1xi32>
    %c20_i32 = arith.constant 20 : i32
    %66 = vector.broadcast %c20_i32 : i32 to vector<16x1xi32>
    %67 = arith.cmpi slt, %65, %66 : vector<16x1xi32>
    %cst_11 = arith.constant 0.000000e+00 : f32
    %68 = vector.broadcast %cst_11 : f32 to vector<16x1xf32>
    %69 = arith.select %67, %61, %68 : vector<16x1xi1>, vector<16x1xf32>
    %cst_12 = arith.constant dense<0.000000e+00> : vector<1xf32>
    %70 = vector.multi_reduction <add>, %69, %cst_12 [0] : vector<16x1xf32> to vector<1xf32>
    %71 = vector.shape_cast %70 : vector<1xf32> to vector<1x1xf32>
    %72 = vector.shape_cast %71 : vector<1x1xf32> to vector<1x1xf32>
    %73 = vector.broadcast %72 : vector<1x1xf32> to vector<8x128xf32>
    %c0_13 = arith.constant 0 : index
    %c0_14 = arith.constant 0 : index
    %74 = vector.load %arg4[%c0_13, %c0_14] : memref<8x128xf32, #tpu.memory_space<vmem>>, vector<8x128xf32>
    tpu.vector_store %arg4[%c0_13, %c0_14], %73 {strides = array<i32>} : memref<8x128xf32, #tpu.memory_space<vmem>>, vector<8x128xf32>,
    return
  }
  func.func @transform_0(%arg0: i32) -> (i32, i32) {
    %c0_i32 = arith.constant 0 : i32
    %c0_i32_0 = arith.constant 0 : i32
    return %arg0, %c0_i32 : i32, i32
  }
  func.func @transform_1(%arg0: i32) -> (i32, i32) {
    %c0_i32 = arith.constant 0 : i32
    %c0_i32_0 = arith.constant 0 : i32
    %c0_i32_1 = arith.constant 0 : i32
    return %c0_i32, %c0_i32_0 : i32, i32
  }
  func.func @transform_2(%arg0: i32) -> (i32, i32) {
    %c0_i32 = arith.constant 0 : i32
    %c0_i32_0 = arith.constant 0 : i32
    %c0_i32_1 = arith.constant 0 : i32
    return %c0_i32, %c0_i32_0 : i32, i32
  }
  func.func @transform_3(%arg0: i32) -> (i32, i32) {
    %c0_i32 = arith.constant 0 : i32
    %c0_i32_0 = arith.constant 0 : i32
    return %arg0, %c0_i32 : i32, i32
  }
}

module attributes {stable_mosaic.version = 11 : i64} {
  func.func @kernel(%arg0: i32, %arg1: memref<16x32xf32, #tpu.memory_space<vmem>>, %arg2: memref<32x1xi32, #tpu.memory_space<vmem>>, %arg3: memref<5x32xf32, #tpu.memory_space<vmem>>, %arg4: memref<8x128xf32, #tpu.memory_space<vmem>>) attributes {dimension_semantics = [#tpu.dimension_semantics<parallel>], iteration_bounds = array<i64: 2>, scalar_prefetch = 0 : i64, scratch_operands = 0 : i64, tpu.core_type = #tpu.core_type<tc>, window_params = [{transform_indices = @transform_0, window_bounds = array<i64: 16, 32>}, {pipeline_mode = #tpu.pipeline_mode<synchronous>, transform_indices = @transform_1, window_bounds = array<i64: 32, 1>}, {pipeline_mode = #tpu.pipeline_mode<synchronous>, transform_indices = @transform_2, window_bounds = array<i64: 5, 32>}, {transform_indices = @transform_3, window_bounds = array<i64: 8, 128>}]} {
    %c0 = arith.constant 0 : index
    %c0_0 = arith.constant 0 : index
    %0 = vector.load %arg1[%c0, %c0_0] : memref<16x32xf32, #tpu.memory_space<vmem>>, vector<16x32xf32>
    %c16_i32 = arith.constant 16 : i32
    %1 = arith.muli %arg0, %c16_i32 : i32
    %2 = tpu.assume_multiple %1, 16 : i32
    %3 = arith.index_cast %2 : i32 to index
    %c0_1 = arith.constant 0 : index
    %4 = vector.load %arg2[%3, %c0_1] : memref<32x1xi32, #tpu.memory_space<vmem>>, vector<16x1xi32>
    %c0_2 = arith.constant 0 : index
    %c0_3 = arith.constant 0 : index
    %5 = vector.load %arg3[%c0_2, %c0_3] : memref<5x32xf32, #tpu.memory_space<vmem>>, vector<5x32xf32>
    %cst = arith.constant 0.000000e+00 : f32
    %6 = vector.broadcast %cst : f32 to vector<16x32xf32>
    %c0_i32 = arith.constant 0 : i32
    %7 = vector.broadcast %c0_i32 : i32 to vector<16x1xi32>
    %8 = arith.cmpi eq, %4, %7 : vector<16x1xi32>
    %9 = vector.extract_strided_slice %5 {offsets = [0, 0], sizes = [1, 32], strides = [1, 1]} : vector<5x32xf32> to vector<1x32xf32>
    %cst_4 = arith.constant 0.000000e+00 : f32
    %10 = vector.shape_cast %8 : vector<16x1xi1> to vector<16x1xi1>
    %11 = vector.broadcast %10 : vector<16x1xi1> to vector<16x32xi1>
    %12 = vector.shape_cast %9 : vector<1x32xf32> to vector<1x32xf32>
    %13 = vector.broadcast %12 : vector<1x32xf32> to vector<16x32xf32>
    %14 = vector.broadcast %cst_4 : f32 to vector<16x32xf32>
    %15 = arith.select %11, %13, %14 : vector<16x32xi1>, vector<16x32xf32>
    %16 = arith.addf %6, %15 : vector<16x32xf32>
    %c1_i32 = arith.constant 1 : i32
    %17 = vector.broadcast %c1_i32 : i32 to vector<16x1xi32>
    %18 = arith.cmpi eq, %4, %17 : vector<16x1xi32>
    %19 = vector.extract_strided_slice %5 {offsets = [1, 0], sizes = [1, 32], strides = [1, 1]} : vector<5x32xf32> to vector<1x32xf32>
    %cst_5 = arith.constant 0.000000e+00 : f32
    %20 = vector.shape_cast %18 : vector<16x1xi1> to vector<16x1xi1>
    %21 = vector.broadcast %20 : vector<16x1xi1> to vector<16x32xi1>
    %22 = vector.shape_cast %19 : vector<1x32xf32> to vector<1x32xf32>
    %23 = vector.broadcast %22 : vector<1x32xf32> to vector<16x32xf32>
    %24 = vector.broadcast %cst_5 : f32 to vector<16x32xf32>
    %25 = arith.select %21, %23, %24 : vector<16x32xi1>, vector<16x32xf32>
    %26 = arith.addf %16, %25 : vector<16x32xf32>
    %c2_i32 = arith.constant 2 : i32
    %27 = vector.broadcast %c2_i32 : i32 to vector<16x1xi32>
    %28 = arith.cmpi eq, %4, %27 : vector<16x1xi32>
    %29 = vector.extract_strided_slice %5 {offsets = [2, 0], sizes = [1, 32], strides = [1, 1]} : vector<5x32xf32> to vector<1x32xf32>
    %cst_6 = arith.constant 0.000000e+00 : f32
    %30 = vector.shape_cast %28 : vector<16x1xi1> to vector<16x1xi1>
    %31 = vector.broadcast %30 : vector<16x1xi1> to vector<16x32xi1>
    %32 = vector.shape_cast %29 : vector<1x32xf32> to vector<1x32xf32>
    %33 = vector.broadcast %32 : vector<1x32xf32> to vector<16x32xf32>
    %34 = vector.broadcast %cst_6 : f32 to vector<16x32xf32>
    %35 = arith.select %31, %33, %34 : vector<16x32xi1>, vector<16x32xf32>
    %36 = arith.addf %26, %35 : vector<16x32xf32>
    %c3_i32 = arith.constant 3 : i32
    %37 = vector.broadcast %c3_i32 : i32 to vector<16x1xi32>
    %38 = arith.cmpi eq, %4, %37 : vector<16x1xi32>
    %39 = vector.extract_strided_slice %5 {offsets = [3, 0], sizes = [1, 32], strides = [1, 1]} : vector<5x32xf32> to vector<1x32xf32>
    %cst_7 = arith.constant 0.000000e+00 : f32
    %40 = vector.shape_cast %38 : vector<16x1xi1> to vector<16x1xi1>
    %41 = vector.broadcast %40 : vector<16x1xi1> to vector<16x32xi1>
    %42 = vector.shape_cast %39 : vector<1x32xf32> to vector<1x32xf32>
    %43 = vector.broadcast %42 : vector<1x32xf32> to vector<16x32xf32>
    %44 = vector.broadcast %cst_7 : f32 to vector<16x32xf32>
    %45 = arith.select %41, %43, %44 : vector<16x32xi1>, vector<16x32xf32>
    %46 = arith.addf %36, %45 : vector<16x32xf32>
    %c4_i32 = arith.constant 4 : i32
    %47 = vector.broadcast %c4_i32 : i32 to vector<16x1xi32>
    %48 = arith.cmpi eq, %4, %47 : vector<16x1xi32>
    %49 = vector.extract_strided_slice %5 {offsets = [4, 0], sizes = [1, 32], strides = [1, 1]} : vector<5x32xf32> to vector<1x32xf32>
    %cst_8 = arith.constant 0.000000e+00 : f32
    %50 = vector.shape_cast %48 : vector<16x1xi1> to vector<16x1xi1>
    %51 = vector.broadcast %50 : vector<16x1xi1> to vector<16x32xi1>
    %52 = vector.shape_cast %49 : vector<1x32xf32> to vector<1x32xf32>
    %53 = vector.broadcast %52 : vector<1x32xf32> to vector<16x32xf32>
    %54 = vector.broadcast %cst_8 : f32 to vector<16x32xf32>
    %55 = arith.select %51, %53, %54 : vector<16x32xi1>, vector<16x32xf32>
    %56 = arith.addf %46, %55 : vector<16x32xf32>
    %57 = arith.subf %0, %56 : vector<16x32xf32>
    %58 = arith.mulf %57, %57 : vector<16x32xf32>
    %cst_9 = arith.constant dense<0.000000e+00> : vector<16xf32>
    %59 = vector.multi_reduction <add>, %58, %cst_9 [1] : vector<16x32xf32> to vector<16xf32>
    %60 = vector.shape_cast %59 : vector<16xf32> to vector<16x1xf32>
    %61 = math.sqrt %60 : vector<16x1xf32>
    %62 = tpu.iota {dimensions = array<i32: 0>} : vector<16x1xi32>
    %c16_i32_10 = arith.constant 16 : i32
    %63 = arith.muli %arg0, %c16_i32_10 : i32
    %64 = vector.broadcast %63 : i32 to vector<16x1xi32>
    %65 = arith.addi %62, %64 : vector<16x1xi32>
    %c20_i32 = arith.constant 20 : i32
    %66 = vector.broadcast %c20_i32 : i32 to vector<16x1xi32>
    %67 = arith.cmpi slt, %65, %66 : vector<16x1xi32>
    %cst_11 = arith.constant 0.000000e+00 : f32
    %68 = vector.broadcast %cst_11 : f32 to vector<16x1xf32>
    %69 = arith.select %67, %61, %68 : vector<16x1xi1>, vector<16x1xf32>
    %cst_12 = arith.constant dense<0.000000e+00> : vector<1xf32>
    %70 = vector.multi_reduction <add>, %69, %cst_12 [0] : vector<16x1xf32> to vector<1xf32>
    %71 = vector.shape_cast %70 : vector<1xf32> to vector<1x1xf32>
    %72 = vector.shape_cast %71 : vector<1x1xf32> to vector<1x1xf32>
    %73 = vector.broadcast %72 : vector<1x1xf32> to vector<8x128xf32>
    %c0_13 = arith.constant 0 : index
    %c0_14 = arith.constant 0 : index
    %74 = vector.load %arg4[%c0_13, %c0_14] : memref<8x128xf32, #tpu.memory_space<vmem>>, vector<8x128xf32>
    tpu.vector_store %arg4[%c0_13, %c0_14], %73 {strides = array<i32>} : memref<8x128xf32, #tpu.memory_space<vmem>>, vector<8x128xf32>,
    return
  }
  func.func @transform_0(%arg0: i32) -> (i32, i32) {
    %c0_i32 = arith.constant 0 : i32
    %c0_i32_0 = arith.constant 0 : i32
    return %arg0, %c0_i32 : i32, i32
  }
  func.func @transform_1(%arg0: i32) -> (i32, i32) {
    %c0_i32 = arith.constant 0 : i32
    %c0_i32_0 = arith.constant 0 : i32
    %c0_i32_1 = arith.constant 0 : i32
    return %c0_i32, %c0_i32_0 : i32, i32
  }
  func.func @transform_2(%arg0: i32) -> (i32, i32) {
    %c0_i32 = arith.constant 0 : i32
    %c0_i32_0 = arith.constant 0 : i32
    %c0_i32_1 = arith.constant 0 : i32
    return %c0_i32, %c0_i32_0 : i32, i32
  }
  func.func @transform_3(%arg0: i32) -> (i32, i32) {
    %c0_i32 = arith.constant 0 : i32
    %c0_i32_0 = arith.constant 0 : i32
    return %arg0, %c0_i32 : i32, i32
  }
}

</mosaic_0001>

<bundles_post_ra>
// kernel: tpu_custom_call.1
= control target key start
LH: loop header
LB: loop body
LE: loop exit
PB: predicated region body
PF: predicated region fallthrough
CT: control target
= control target key end

     0   :  { %8 = vsyncpa [#allocation3], 0  ;;  %s681_s0 = inlined_call_operand.vmem [shape: f32[20,32], index: 0, kind: input, shape index: {}]   ;;  %s682_s1 = inlined_call_operand.vmem [shape: s32[32,1], index: 1, kind: input, shape index: {}]   ;;  %s683_s2 = inlined_call_operand.vmem [shape: f32[5,32], index: 2, kind: input, shape index: {}]   ;;  %s684_s3 = inlined_call_operand.hbm [shape: f32[16,128], index: 3, kind: output, shape index: {}]  }
   0x1   :  { %10 = vsyncpa [#allocation3 + $0x1], 0  ;;  %s560_s12 = smov 0   ;;  %s562_s13 = smov 0  }
   0x2   :  { %s564_s14 = smov 0   ;;  %s566_s15 = smov 0  }
   0x3 LB: > { %s581_s16 = sadd.s32 4294967295, %s536_s15   ;;  %s416_s17 = sadd.s32 4294967294, %s536_s15   ;;  %s536_s15 = sphi %s566_s15, %s690_s15   ;;  %s532_s14 = sphi %s564_s14, %s689_s14   ;;  %s528_s13 = sphi %s562_s13, %s688_s13   ;;  %s524_s12 = sphi %s560_s12, %s687_s12  }
   0x4   : > { %s585_s18 = sadd.s32 1, %s536_s15   ;;  %s91_s19 = sadd.s32 1, %s532_s14 }
   0x5   : > { %s88_s20 = ssub.s32 %s536_s15, %s585_s18  ;;  %p101_p0 = scmp.ne.s32.totalorder %s532_s14, %s528_s13 }
   0x6   : > { %p89_p1 = scmp.eq.s32.totalorder %s88_s20, 0  ;;  %p102_p2 = scmp.eq.s32.totalorder %s581_s16, 1 }
   0x7   : > { %p107_p3 = scmp.ne.s32.totalorder %s528_s13, %s524_s12  ;;  %p108_p4 = scmp.eq.s32.totalorder %s416_s17, 1 }
   0x8   : > { %s596_s21 = scalar_select %p89_p1, %s532_s14, %s91_s19  }
   0x9   : > { %p598_p5 = por %p102_p2, %p101_p0  ;;  %p602_p6 = por %p108_p4, %p107_p3 }
   0xa   : > { %p419_p7 = scmp.ge.s32.totalorder %s536_s15, 1  ;;  %p149_p8 = scmp.lt.s32.totalorder %s536_s15, 3 }
   0xc   : > { %p150_p9 = pnand %p419_p7, %p149_p8 }
   0xd   : > { %s423_s24 = sshll.u32 (!%p150_p9), %s581_s16, 4  ;;  %v210_v0 = vlaneseq (!%p150_p9)  ;;  %v538_v1 = vmov (!%p150_p9), 0   ;;  %s421_s28 = sshll.u32 (!%p150_p9), %s581_s16, 1  ;;  %v197_v23 = vld [vmem:[%s683_s2] sm:$0x1f] (!%p150_p9) }
   0xe   : > { %153 = sbr.rel (%p150_p9) target bundleno = 358 (0x166), region = 32  ;;  %469 = vset.pattern.permute.xlu1 (!%p150_p9), %v538_v1  ;;  %468 = vset.pattern.permute.xlu0 (!%p150_p9), %v538_v1  ;;  %s194_s27 = scalar_lea.vmem (!%p150_p9), %s682_s1, %s423_s24  ;;  %v326_v2 = vstv (!%p150_p9), %s423_s24 }
   0xf   : > { %v195_v3 = vld [vmem:[%s194_s27] sm:$0xff] (!%p150_p9)  ;;  %v612_v4 = vshrl.u32 (!%p150_p9), %v210_v0, 7  ;;  %v196_v5 = vld [vmem:[%s194_s27 + $0x8] sm:$0xff] (!%p150_p9)  ;;  %p182_p10 = scmp.lt.s32.totalorder (!%p150_p9), %s421_s28, 2  ;;  %s174_s8 = sand.u32 (!%p150_p9), 1, %s528_s13  }
  0x10   : > { %vm218_vm0 = vcmp.eq.s32.totalorder (!%p150_p9), %v195_v3, 1  ;;  %vm198_vm1 = vcmp.eq.s32.totalorder (!%p150_p9), %v195_v3, 0  ;;  %vm219_vm2 = vcmp.eq.s32.totalorder (!%p150_p9), %v196_v5, 1  ;;  %vm199_vm3 = vcmp.eq.s32.totalorder (!%p150_p9), %v196_v5, 0  ;;  %s420_s9 = sshll.u32 (!%p150_p9), %s174_s8, 3  ;;  %s425_s10 = sshll.u32 (!%p150_p9), %s581_s16, 7 }
  0x11   : > { %v220_v6 = vsel (!%p150_p9), %vm218_vm0, 1, %v538_v1  ;;  %v325_v7 = vadd.s32 (!%p150_p9), 8, %v612_v4  ;;  %v616_v8 = vadd.s32 (!%p150_p9), %v326_v2, %v612_v4  ;;  %v200_v9 = vsel (!%p150_p9), %vm198_vm1, 1, %v538_v1  ;;  %s176_s11 = scalar_lea.vmem (!%p150_p9), [#allocation2], %s420_s9  ;;  %s639_s24 = scalar_lea.hbm (!%p150_p9), %s684_s3, %s425_s10 }
  0x12   : > { %223 = vperm.xlu1 (!%p150_p9), %469, %v220_v6   ;;  %203 = vperm.xlu0 (!%p150_p9), %468, %v200_v9   ;;  %v221_v11 = vsel (!%p150_p9), %vm219_vm2, 1, %v538_v1  ;;  %v201_v12 = vsel (!%p150_p9), %vm199_vm3, 1, %v538_v1  ;;  %vm239_vm4 = vcmp.eq.s32.totalorder (!%p150_p9), %v196_v5, 2  ;;  %vm238_vm5 = vcmp.eq.s32.totalorder (!%p150_p9), %v195_v3, 2  ;;  %s355_s17 = sshll.u32 (!%p150_p9), %s176_s11, 4  ;;  %s342_s25 = scalar_lea.sflag (!%p150_p9), [#allocation3], %s174_s8  ;;  %s641_s17 = int_to_ptr.vmem [resolvable:$true] %s355_s17 }
  0x13   : > { %v618_v10 = vadd.s32 (!%p150_p9), %v326_v2, %v325_v7  ;;  %v241_v13 = vsel (!%p150_p9), %vm239_vm4, 1, %v538_v1  ;;  %v240_v14 = vsel (!%p150_p9), %vm238_vm5, 1, %v538_v1  ;;  %vm259_vm6 = vcmp.eq.s32.totalorder (!%p150_p9), %v196_v5, 3  ;;  %s474_s26 = scalar_lea.vmem (!%p150_p9), %s641_s17, 128  ;;  %s539_s16 = smov (!%p150_p9), [#allocation2]  }
  0x14   : > { %vm258_vm7 = vcmp.eq.s32.totalorder (!%p150_p9), %v195_v3, 3  ;;  %v261_v15 = vsel (!%p150_p9), %vm259_vm6, 1, %v538_v1  ;;  %vm279_vm8 = vcmp.eq.s32.totalorder (!%p150_p9), %v196_v5, 4  ;;  %vm278_vm9 = vcmp.eq.s32.totalorder (!%p150_p9), %v195_v3, 4  ;;  %p475_p11 = scmp.ne.s32.totalorder (!%p150_p9), %s641_s17, %s474_s26  ;;  %s478_s27 = sshll.u32 (!%p150_p9), %s539_s16, 4  ;;  %s479_s27 = int_to_ptr.vmem [resolvable:$false] %s478_s27 }
  0x15   : > { %v260_v16 = vsel %vm258_vm7, 1, %v538_v1  ;;  %v281_v17 = vsel %vm279_vm8, 1, %v538_v1  ;;  %v280_v18 = vsel %vm278_vm9, 1, %v538_v1  ;;  %v232_v21 = vsub.s32 1, %v612_v4  ;;  %s692_s28 = smov (!%p182_p10, %s421_s28), 2  ;;  %p481_p0 = scmp.lt.s32.totalorder %s641_s17, %s479_s27 }
  0x16   : > { %226 = vperm.xlu1 %469, %v221_v11   ;;  %206 = vperm.xlu0 %468, %v201_v12   ;;  %v212_v22 = vsub.s32 0, %v612_v4  ;;  %v252_v26 = vsub.s32 2, %v612_v4  ;;  %v272_v27 = vsub.s32 3, %v612_v4  ;;  %v292_v34 = vsub.s32 4, %v612_v4  ;;  %s422_s4 = sshll.u32 %s692_s28, 3  ;;  %p476_p12 = pnand %p475_p11, %p598_p5 }
  0x17   : > { %v233_v28 = vrot.slane %v197_v23, %v232_v21  ;;  %s185_s7 = scalar_lea.vmem %s681_s0, %s422_s4  ;;  %vm302_vm4 = vcmask 261120   ;;  %vm329_vm5 = vcmp.lt.s32.totalorder %v616_v8, 20  ;;  %vm330_vm6 = vcmp.lt.s32.totalorder %v618_v10, 20  ;;  %s480_s28 = scalar_lea.vmem %s479_s27, 256 }
  0x18   : > { %v213_v29 = vrot.slane %v197_v23, %v212_v22  ;;  %v253_v30 = vrot.slane %v197_v23, %v252_v26  ;;  %v273_v33 = vrot.slane %v197_v23, %v272_v27  ;;  %v293_v47 = vrot.slane %v197_v23, %v292_v34  ;;  %v192_v56 = vld [vmem:[%s185_s7 + $0x8] sm:$0xff]  ;;  %v191_v57 = vld [vmem:[%s185_s7] sm:$0xff]  ;;  %p477_p13 = pneg %p476_p12  ;;  %p482_p1 = scmp.lt.s32.totalorder %s480_s28, %s474_s26 }
  0x1a   : > { %246 = vperm.xlu1 %469, %v241_v13   ;;  %243 = vperm.xlu0 %468, %v240_v14   ;;  %p483_p2 = por %p482_p1, %p481_p0 }
  0x1c   : > { %p484_p3 = pnand %p483_p2, %p477_p13 }
  0x1e   : > { %266 = vperm.xlu1 %469, %v261_v15   ;;  %263 = vperm.xlu0 %468, %v260_v16  }
  0x22   : > { %286 = vperm.xlu1 %469, %v281_v17   ;;  %283 = vperm.xlu0 %468, %v280_v18  }
  0x91   : > { %v224_v19 = vpop.permute.xlu1 %223  ;;  %v204_v20 = vpop.permute.xlu0 %203 }
  0x92   : > { %vm228_vm10 = vcmp.eq.s32.totalorder %v224_v19, 1  ;;  %vm208_vm11 = vcmp.eq.s32.totalorder %v204_v20, 1 }
  0x93   : > { %v234_v35 = vsel %vm228_vm10, %v233_v28, 0.0  ;;  %v214_v36 = vsel %vm208_vm11, %v213_v29, 0.0 }
  0x94   : > { %v236_v43 = vadd.f32 %v234_v35, %v214_v36 }
  0x95   : > { %v227_v24 = vpop.permute.xlu1 %226  ;;  %v207_v25 = vpop.permute.xlu0 %206 }
  0x96   : > { %vm229_vm12 = vcmp.eq.s32.totalorder %v227_v24, 1  ;;  %vm209_vm13 = vcmp.eq.s32.totalorder %v207_v25, 1 }
  0x97   : > { %v235_v37 = vsel %vm229_vm12, %v233_v28, 0.0  ;;  %v215_v38 = vsel %vm209_vm13, %v213_v29, 0.0 }
  0x98   : > { %v237_v44 = vadd.f32 %v235_v37, %v215_v38 }
  0x99   : > { %v247_v31 = vpop.permute.xlu1 %246  ;;  %v244_v32 = vpop.permute.xlu0 %243 }
  0x9a   : > { %vm249_vm14 = vcmp.eq.s32.totalorder %v247_v31, 1  ;;  %vm248_vm15 = vcmp.eq.s32.totalorder %v244_v32, 1 }
  0x9b   : > { %v255_v39 = vsel %vm249_vm14, %v253_v30, 0.0  ;;  %v254_v40 = vsel %vm248_vm15, %v253_v30, 0.0 }
  0x9c   : > { %v257_v48 = vadd.f32 %v255_v39, %v237_v44  ;;  %v256_v49 = vadd.f32 %v254_v40, %v236_v43 }
  0x9d   : > { %v267_v41 = vpop.permute.xlu1 %266  ;;  %v264_v42 = vpop.permute.xlu0 %263 }
  0x9e   : > { %vm269_vm0 = vcmp.eq.s32.totalorder %v267_v41, 1  ;;  %vm268_vm1 = vcmp.eq.s32.totalorder %v264_v42, 1 }
  0x9f   : > { %v275_v45 = vsel %vm269_vm0, %v273_v33, 0.0  ;;  %v274_v46 = vsel %vm268_vm1, %v273_v33, 0.0 }
  0xa0   : > { %v277_v52 = vadd.f32 %v275_v45, %v257_v48  ;;  %v276_v53 = vadd.f32 %v274_v46, %v256_v49 }
  0xa1   : > { %v287_v50 = vpop.permute.xlu1 %286  ;;  %v284_v51 = vpop.permute.xlu0 %283 }
  0xa2   : > { %vm289_vm2 = vcmp.eq.s32.totalorder %v287_v50, 1  ;;  %vm288_vm3 = vcmp.eq.s32.totalorder %v284_v51, 1 }
  0xa3   : > { %v295_v54 = vsel %vm289_vm2, %v293_v47, 0.0  ;;  %v294_v55 = vsel %vm288_vm3, %v293_v47, 0.0 }
  0xa4   : > { %v297_v58 = vadd.f32 %v295_v54, %v277_v52  ;;  %v296_v59 = vadd.f32 %v294_v55, %v276_v53 }
  0xa6   : > { %v299_v60 = vsub.f32 %v192_v56, %v297_v58  ;;  %v298_v61 = vsub.f32 %v191_v57, %v296_v59 }
  0xa8   : > { %v301_v62 = vmul.f32 %v299_v60, %v299_v60  ;;  %v300_v63 = vmul.f32 %v298_v61, %v298_v61 }
  0xaa   : > { %v306_v0 = vsel %vm302_vm4, %v301_v62, 0.0  ;;  %v303_v1 = vsel %vm302_vm4, %v300_v63, 0.0 }
  0xab   : > { %307 = vadd.xlane.f32.xlu1 %v306_v0  ;;  %304 = vadd.xlane.f32.xlu0 %v303_v1 }
 0x138   : > { %v308_v2 = vpop.xlane.xlu1 %307  ;;  %v305_v3 = vpop.xlane.xlu0 %304 }
 0x139   : > { %470 = vrsqrt.f32 %v308_v2  ;;  %vm318_vm7 = vcmp.eq.f32.partialorder %v308_v2, inf  ;;  %v321_v7 = vand.u32 2147483648, %v308_v2  ;;  %vm320_vm8 = vcmp.eq.f32.partialorder %v308_v2, 0.0 }
 0x13a   : > { %472 = vrsqrt.f32 %v305_v3  ;;  %vm311_vm9 = vcmp.eq.f32.partialorder %v305_v3, inf  ;;  %v314_v12 = vand.u32 2147483648, %v305_v3  ;;  %vm313_vm10 = vcmp.eq.f32.partialorder %v305_v3, 0.0 }
 0x143   : > { %v471_v4 = vpop.eup %470 }
 0x144   : > { %v473_v5 = vpop.eup %472  ;;  %v317_v6 = vmul.f32 %v471_v4, %v308_v2 }
 0x145   : > { %v310_v9 = vmul.f32 %v473_v5, %v305_v3 }
 0x146   : > { %v319_v11 = vsel %vm318_vm7, %v308_v2, %v317_v6 }
 0x147   : > { %v322_v13 = vsel %vm320_vm8, %v321_v7, %v319_v11  ;;  %v312_v14 = vsel %vm311_vm9, %v305_v3, %v310_v9 }
 0x148   : > { %v332_v15 = vsel %vm330_vm6, %v322_v13, 0.0  ;;  %v315_v16 = vsel %vm313_vm10, %v314_v12, %v312_v14 }
 0x149   : > { %v331_v17 = vsel %vm329_vm5, %v315_v16, 0.0 }
 0x14a   : > { %v333_v8 = vadd.f32 %v332_v15, %v331_v17 }
 0x14c   : > { %v334_v18 = vrot.slane %v333_v8, 4 }
 0x14e   : > { %v335_v10 = vadd.f32 %v334_v18, %v333_v8 }
 0x150   : > { %v336_v19 = vrot.slane %v335_v10, 2 }
 0x152   : > { %v337_v20 = vadd.f32 %v336_v19, %v335_v10 }
 0x154   : > { %v338_v21 = vrot.slane %v337_v20, 1 }
 0x156   : > { %v339_v22 = vadd.f32 %v338_v21, %v337_v20 }
 0x158   : > { %340 = vst [vmem:[%s176_s11] sm:$0xff] %v339_v22 }
 0x159   : > { %487 = shalt.err (!%p484_p3)
}
 0x15a   : > { %s488_s29 = scalar_lea.hbm %s639_s24, 128  ;;  %s492_s5 = scalar_lea.hbm %s684_s3, 256 }
 0x15b   : > { %p489_p4 = scmp.ne.s32.totalorder %s639_s24, %s488_s29  ;;  %p493_p9 = scmp.lt.u32.totalorder %s639_s24, %s684_s3 }
 0x15c   : > { %p494_p10 = scmp.lt.u32.totalorder %s492_s5, %s488_s29  ;;  %p496_p12 = scmp.lt.u32.totalorder %s488_s29, %s639_s24 }
 0x15d   : > { %p490_p7 = pnand %p489_p4, %p598_p5 }
 0x15e   : > { %p495_p11 = por %p494_p10, %p493_p9 }
 0x15f   : > { %p491_p8 = pneg %p490_p7 }
 0x160   : > { %p497_p13 = por %p496_p12, %p495_p11 }
 0x162   : > { %p498_p0 = pnand %p497_p13, %p491_p8 }
 0x164   : > { %501 = shalt.err (!%p498_p0)
}
 0x165   : > { %428 = dma.vmem_to_hbm [thread:$0]  (%p598_p5), %s641_s17, 128, %s639_s24, %s342_s25  }
 0x166 PF: > { %p434_p1 = scmp.ge.s32.totalorder %s536_s15, 2  ;;  %s367_s8 = sand.u32 1, %s524_s12  }
 0x167   : > { %s368_s9 = scalar_lea.sflag [#allocation3], %s367_s8 }
 0x168   : > { %p431_p2 = pnand %p434_p1, %p602_p6 }
 0x16a   : > { %519 = dma.done.wait (!%p431_p2), %s368_s9, 128  }
 0x16b   : > { %521 = vsyncadd (!%p431_p2), %s368_s9, 4294967168  ;;  %p13_p3 = scmp.ge.s32.totalorder %s585_s18, 4   ;;  %s687_s12 = smov %s528_s13 }
 0x16c   : > { %s688_s13 = smov %s532_s14  ;;  %s689_s14 = smov %s596_s21 }
 0x16d   : > { %s690_s15 = smov %s585_s18  ;;  %15 = sbr.rel (!%p13_p3) target bundleno = 3 (0x3), region = 68 }
 0x174   :  { %373 = vsyncpa [#allocation3], 1 }
 0x175   :  { %375 = vsyncpa [#allocation3 + $0x1], 1 }

// kernel: tpu_custom_call.1
= control target key start
LH: loop header
LB: loop body
LE: loop exit
PB: predicated region body
PF: predicated region fallthrough
CT: control target
= control target key end

     0   :  { %8 = vsyncpa [#allocation3], 0  ;;  %s681_s0 = inlined_call_operand.vmem [shape: f32[20,32], index: 0, kind: input, shape index: {}]   ;;  %s682_s1 = inlined_call_operand.vmem [shape: s32[32,1], index: 1, kind: input, shape index: {}]   ;;  %s683_s2 = inlined_call_operand.vmem [shape: f32[5,32], index: 2, kind: input, shape index: {}]   ;;  %s684_s3 = inlined_call_operand.hbm [shape: f32[16,128], index: 3, kind: output, shape index: {}]  }
   0x1   :  { %10 = vsyncpa [#allocation3 + $0x1], 0  ;;  %s560_s12 = smov 0   ;;  %s562_s13 = smov 0  }
   0x2   :  { %s564_s14 = smov 0   ;;  %s566_s15 = smov 0  }
   0x3 LB: > { %s581_s16 = sadd.s32 4294967295, %s536_s15   ;;  %s416_s17 = sadd.s32 4294967294, %s536_s15   ;;  %s536_s15 = sphi %s566_s15, %s690_s15   ;;  %s532_s14 = sphi %s564_s14, %s689_s14   ;;  %s528_s13 = sphi %s562_s13, %s688_s13   ;;  %s524_s12 = sphi %s560_s12, %s687_s12  }
   0x4   : > { %s585_s18 = sadd.s32 1, %s536_s15   ;;  %s91_s19 = sadd.s32 1, %s532_s14 }
   0x5   : > { %s88_s20 = ssub.s32 %s536_s15, %s585_s18  ;;  %p101_p0 = scmp.ne.s32.totalorder %s532_s14, %s528_s13 }
   0x6   : > { %p89_p1 = scmp.eq.s32.totalorder %s88_s20, 0  ;;  %p102_p2 = scmp.eq.s32.totalorder %s581_s16, 1 }
   0x7   : > { %p107_p3 = scmp.ne.s32.totalorder %s528_s13, %s524_s12  ;;  %p108_p4 = scmp.eq.s32.totalorder %s416_s17, 1 }
   0x8   : > { %s596_s21 = scalar_select %p89_p1, %s532_s14, %s91_s19  }
   0x9   : > { %p598_p5 = por %p102_p2, %p101_p0  ;;  %p602_p6 = por %p108_p4, %p107_p3 }
   0xa   : > { %p419_p7 = scmp.ge.s32.totalorder %s536_s15, 1  ;;  %p149_p8 = scmp.lt.s32.totalorder %s536_s15, 3 }
   0xc   : > { %p150_p9 = pnand %p419_p7, %p149_p8 }
   0xd   : > { %s423_s24 = sshll.u32 (!%p150_p9), %s581_s16, 4  ;;  %v210_v0 = vlaneseq (!%p150_p9)  ;;  %v538_v1 = vmov (!%p150_p9), 0   ;;  %s421_s28 = sshll.u32 (!%p150_p9), %s581_s16, 1  ;;  %v197_v23 = vld [vmem:[%s683_s2] sm:$0x1f] (!%p150_p9) }
   0xe   : > { %153 = sbr.rel (%p150_p9) target bundleno = 358 (0x166), region = 32  ;;  %469 = vset.pattern.permute.xlu1 (!%p150_p9), %v538_v1  ;;  %468 = vset.pattern.permute.xlu0 (!%p150_p9), %v538_v1  ;;  %s194_s27 = scalar_lea.vmem (!%p150_p9), %s682_s1, %s423_s24  ;;  %v326_v2 = vstv (!%p150_p9), %s423_s24 }
   0xf   : > { %v195_v3 = vld [vmem:[%s194_s27] sm:$0xff] (!%p150_p9)  ;;  %v612_v4 = vshrl.u32 (!%p150_p9), %v210_v0, 7  ;;  %v196_v5 = vld [vmem:[%s194_s27 + $0x8] sm:$0xff] (!%p150_p9)  ;;  %p182_p10 = scmp.lt.s32.totalorder (!%p150_p9), %s421_s28, 2  ;;  %s174_s8 = sand.u32 (!%p150_p9), 1, %s528_s13  }
  0x10   : > { %vm218_vm0 = vcmp.eq.s32.totalorder (!%p150_p9), %v195_v3, 1  ;;  %vm198_vm1 = vcmp.eq.s32.totalorder (!%p150_p9), %v195_v3, 0  ;;  %vm219_vm2 = vcmp.eq.s32.totalorder (!%p150_p9), %v196_v5, 1  ;;  %vm199_vm3 = vcmp.eq.s32.totalorder (!%p150_p9), %v196_v5, 0  ;;  %s420_s9 = sshll.u32 (!%p150_p9), %s174_s8, 3  ;;  %s425_s10 = sshll.u32 (!%p150_p9), %s581_s16, 7 }
  0x11   : > { %v220_v6 = vsel (!%p150_p9), %vm218_vm0, 1, %v538_v1  ;;  %v325_v7 = vadd.s32 (!%p150_p9), 8, %v612_v4  ;;  %v616_v8 = vadd.s32 (!%p150_p9), %v326_v2, %v612_v4  ;;  %v200_v9 = vsel (!%p150_p9), %vm198_vm1, 1, %v538_v1  ;;  %s176_s11 = scalar_lea.vmem (!%p150_p9), [#allocation2], %s420_s9  ;;  %s639_s24 = scalar_lea.hbm (!%p150_p9), %s684_s3, %s425_s10 }
  0x12   : > { %223 = vperm.xlu1 (!%p150_p9), %469, %v220_v6   ;;  %203 = vperm.xlu0 (!%p150_p9), %468, %v200_v9   ;;  %v221_v11 = vsel (!%p150_p9), %vm219_vm2, 1, %v538_v1  ;;  %v201_v12 = vsel (!%p150_p9), %vm199_vm3, 1, %v538_v1  ;;  %vm239_vm4 = vcmp.eq.s32.totalorder (!%p150_p9), %v196_v5, 2  ;;  %vm238_vm5 = vcmp.eq.s32.totalorder (!%p150_p9), %v195_v3, 2  ;;  %s355_s17 = sshll.u32 (!%p150_p9), %s176_s11, 4  ;;  %s342_s25 = scalar_lea.sflag (!%p150_p9), [#allocation3], %s174_s8  ;;  %s641_s17 = int_to_ptr.vmem [resolvable:$true] %s355_s17 }
  0x13   : > { %v618_v10 = vadd.s32 (!%p150_p9), %v326_v2, %v325_v7  ;;  %v241_v13 = vsel (!%p150_p9), %vm239_vm4, 1, %v538_v1  ;;  %v240_v14 = vsel (!%p150_p9), %vm238_vm5, 1, %v538_v1  ;;  %vm259_vm6 = vcmp.eq.s32.totalorder (!%p150_p9), %v196_v5, 3  ;;  %s474_s26 = scalar_lea.vmem (!%p150_p9), %s641_s17, 128  ;;  %s539_s16 = smov (!%p150_p9), [#allocation2]  }
  0x14   : > { %vm258_vm7 = vcmp.eq.s32.totalorder (!%p150_p9), %v195_v3, 3  ;;  %v261_v15 = vsel (!%p150_p9), %vm259_vm6, 1, %v538_v1  ;;  %vm279_vm8 = vcmp.eq.s32.totalorder (!%p150_p9), %v196_v5, 4  ;;  %vm278_vm9 = vcmp.eq.s32.totalorder (!%p150_p9), %v195_v3, 4  ;;  %p475_p11 = scmp.ne.s32.totalorder (!%p150_p9), %s641_s17, %s474_s26  ;;  %s478_s27 = sshll.u32 (!%p150_p9), %s539_s16, 4  ;;  %s479_s27 = int_to_ptr.vmem [resolvable:$false] %s478_s27 }
  0x15   : > { %v260_v16 = vsel %vm258_vm7, 1, %v538_v1  ;;  %v281_v17 = vsel %vm279_vm8, 1, %v538_v1  ;;  %v280_v18 = vsel %vm278_vm9, 1, %v538_v1  ;;  %v232_v21 = vsub.s32 1, %v612_v4  ;;  %s692_s28 = smov (!%p182_p10, %s421_s28), 2  ;;  %p481_p0 = scmp.lt.s32.totalorder %s641_s17, %s479_s27 }
  0x16   : > { %226 = vperm.xlu1 %469, %v221_v11   ;;  %206 = vperm.xlu0 %468, %v201_v12   ;;  %v212_v22 = vsub.s32 0, %v612_v4  ;;  %v252_v26 = vsub.s32 2, %v612_v4  ;;  %v272_v27 = vsub.s32 3, %v612_v4  ;;  %v292_v34 = vsub.s32 4, %v612_v4  ;;  %s422_s4 = sshll.u32 %s692_s28, 3  ;;  %p476_p12 = pnand %p475_p11, %p598_p5 }
  0x17   : > { %v233_v28 = vrot.slane %v197_v23, %v232_v21  ;;  %s185_s7 = scalar_lea.vmem %s681_s0, %s422_s4  ;;  %vm302_vm4 = vcmask 261120   ;;  %vm329_vm5 = vcmp.lt.s32.totalorder %v616_v8, 20  ;;  %vm330_vm6 = vcmp.lt.s32.totalorder %v618_v10, 20  ;;  %s480_s28 = scalar_lea.vmem %s479_s27, 256 }
  0x18   : > { %v213_v29 = vrot.slane %v197_v23, %v212_v22  ;;  %v253_v30 = vrot.slane %v197_v23, %v252_v26  ;;  %v273_v33 = vrot.slane %v197_v23, %v272_v27  ;;  %v293_v47 = vrot.slane %v197_v23, %v292_v34  ;;  %v192_v56 = vld [vmem:[%s185_s7 + $0x8] sm:$0xff]  ;;  %v191_v57 = vld [vmem:[%s185_s7] sm:$0xff]  ;;  %p477_p13 = pneg %p476_p12  ;;  %p482_p1 = scmp.lt.s32.totalorder %s480_s28, %s474_s26 }
  0x1a   : > { %246 = vperm.xlu1 %469, %v241_v13   ;;  %243 = vperm.xlu0 %468, %v240_v14   ;;  %p483_p2 = por %p482_p1, %p481_p0 }
  0x1c   : > { %p484_p3 = pnand %p483_p2, %p477_p13 }
  0x1e   : > { %266 = vperm.xlu1 %469, %v261_v15   ;;  %263 = vperm.xlu0 %468, %v260_v16  }
  0x22   : > { %286 = vperm.xlu1 %469, %v281_v17   ;;  %283 = vperm.xlu0 %468, %v280_v18  }
  0x91   : > { %v224_v19 = vpop.permute.xlu1 %223  ;;  %v204_v20 = vpop.permute.xlu0 %203 }
  0x92   : > { %vm228_vm10 = vcmp.eq.s32.totalorder %v224_v19, 1  ;;  %vm208_vm11 = vcmp.eq.s32.totalorder %v204_v20, 1 }
  0x93   : > { %v234_v35 = vsel %vm228_vm10, %v233_v28, 0.0  ;;  %v214_v36 = vsel %vm208_vm11, %v213_v29, 0.0 }
  0x94   : > { %v236_v43 = vadd.f32 %v234_v35, %v214_v36 }
  0x95   : > { %v227_v24 = vpop.permute.xlu1 %226  ;;  %v207_v25 = vpop.permute.xlu0 %206 }
  0x96   : > { %vm229_vm12 = vcmp.eq.s32.totalorder %v227_v24, 1  ;;  %vm209_vm13 = vcmp.eq.s32.totalorder %v207_v25, 1 }
  0x97   : > { %v235_v37 = vsel %vm229_vm12, %v233_v28, 0.0  ;;  %v215_v38 = vsel %vm209_vm13, %v213_v29, 0.0 }
  0x98   : > { %v237_v44 = vadd.f32 %v235_v37, %v215_v38 }
  0x99   : > { %v247_v31 = vpop.permute.xlu1 %246  ;;  %v244_v32 = vpop.permute.xlu0 %243 }
  0x9a   : > { %vm249_vm14 = vcmp.eq.s32.totalorder %v247_v31, 1  ;;  %vm248_vm15 = vcmp.eq.s32.totalorder %v244_v32, 1 }
  0x9b   : > { %v255_v39 = vsel %vm249_vm14, %v253_v30, 0.0  ;;  %v254_v40 = vsel %vm248_vm15, %v253_v30, 0.0 }
  0x9c   : > { %v257_v48 = vadd.f32 %v255_v39, %v237_v44  ;;  %v256_v49 = vadd.f32 %v254_v40, %v236_v43 }
  0x9d   : > { %v267_v41 = vpop.permute.xlu1 %266  ;;  %v264_v42 = vpop.permute.xlu0 %263 }
  0x9e   : > { %vm269_vm0 = vcmp.eq.s32.totalorder %v267_v41, 1  ;;  %vm268_vm1 = vcmp.eq.s32.totalorder %v264_v42, 1 }
  0x9f   : > { %v275_v45 = vsel %vm269_vm0, %v273_v33, 0.0  ;;  %v274_v46 = vsel %vm268_vm1, %v273_v33, 0.0 }
  0xa0   : > { %v277_v52 = vadd.f32 %v275_v45, %v257_v48  ;;  %v276_v53 = vadd.f32 %v274_v46, %v256_v49 }
  0xa1   : > { %v287_v50 = vpop.permute.xlu1 %286  ;;  %v284_v51 = vpop.permute.xlu0 %283 }
  0xa2   : > { %vm289_vm2 = vcmp.eq.s32.totalorder %v287_v50, 1  ;;  %vm288_vm3 = vcmp.eq.s32.totalorder %v284_v51, 1 }
  0xa3   : > { %v295_v54 = vsel %vm289_vm2, %v293_v47, 0.0  ;;  %v294_v55 = vsel %vm288_vm3, %v293_v47, 0.0 }
  0xa4   : > { %v297_v58 = vadd.f32 %v295_v54, %v277_v52  ;;  %v296_v59 = vadd.f32 %v294_v55, %v276_v53 }
  0xa6   : > { %v299_v60 = vsub.f32 %v192_v56, %v297_v58  ;;  %v298_v61 = vsub.f32 %v191_v57, %v296_v59 }
  0xa8   : > { %v301_v62 = vmul.f32 %v299_v60, %v299_v60  ;;  %v300_v63 = vmul.f32 %v298_v61, %v298_v61 }
  0xaa   : > { %v306_v0 = vsel %vm302_vm4, %v301_v62, 0.0  ;;  %v303_v1 = vsel %vm302_vm4, %v300_v63, 0.0 }
  0xab   : > { %307 = vadd.xlane.f32.xlu1 %v306_v0  ;;  %304 = vadd.xlane.f32.xlu0 %v303_v1 }
 0x138   : > { %v308_v2 = vpop.xlane.xlu1 %307  ;;  %v305_v3 = vpop.xlane.xlu0 %304 }
 0x139   : > { %470 = vrsqrt.f32 %v308_v2  ;;  %vm318_vm7 = vcmp.eq.f32.partialorder %v308_v2, inf  ;;  %v321_v7 = vand.u32 2147483648, %v308_v2  ;;  %vm320_vm8 = vcmp.eq.f32.partialorder %v308_v2, 0.0 }
 0x13a   : > { %472 = vrsqrt.f32 %v305_v3  ;;  %vm311_vm9 = vcmp.eq.f32.partialorder %v305_v3, inf  ;;  %v314_v12 = vand.u32 2147483648, %v305_v3  ;;  %vm313_vm10 = vcmp.eq.f32.partialorder %v305_v3, 0.0 }
 0x143   : > { %v471_v4 = vpop.eup %470 }
 0x144   : > { %v473_v5 = vpop.eup %472  ;;  %v317_v6 = vmul.f32 %v471_v4, %v308_v2 }
 0x145   : > { %v310_v9 = vmul.f32 %v473_v5, %v305_v3 }
 0x146   : > { %v319_v11 = vsel %vm318_vm7, %v308_v2, %v317_v6 }
 0x147   : > { %v322_v13 = vsel %vm320_vm8, %v321_v7, %v319_v11  ;;  %v312_v14 = vsel %vm311_vm9, %v305_v3, %v310_v9 }
 0x148   : > { %v332_v15 = vsel %vm330_vm6, %v322_v13, 0.0  ;;  %v315_v16 = vsel %vm313_vm10, %v314_v12, %v312_v14 }
 0x149   : > { %v331_v17 = vsel %vm329_vm5, %v315_v16, 0.0 }
 0x14a   : > { %v333_v8 = vadd.f32 %v332_v15, %v331_v17 }
 0x14c   : > { %v334_v18 = vrot.slane %v333_v8, 4 }
 0x14e   : > { %v335_v10 = vadd.f32 %v334_v18, %v333_v8 }
 0x150   : > { %v336_v19 = vrot.slane %v335_v10, 2 }
 0x152   : > { %v337_v20 = vadd.f32 %v336_v19, %v335_v10 }
 0x154   : > { %v338_v21 = vrot.slane %v337_v20, 1 }
 0x156   : > { %v339_v22 = vadd.f32 %v338_v21, %v337_v20 }
 0x158   : > { %340 = vst [vmem:[%s176_s11] sm:$0xff] %v339_v22 }
 0x159   : > { %487 = shalt.err (!%p484_p3)
}
 0x15a   : > { %s488_s29 = scalar_lea.hbm %s639_s24, 128  ;;  %s492_s5 = scalar_lea.hbm %s684_s3, 256 }
 0x15b   : > { %p489_p4 = scmp.ne.s32.totalorder %s639_s24, %s488_s29  ;;  %p493_p9 = scmp.lt.u32.totalorder %s639_s24, %s684_s3 }
 0x15c   : > { %p494_p10 = scmp.lt.u32.totalorder %s492_s5, %s488_s29  ;;  %p496_p12 = scmp.lt.u32.totalorder %s488_s29, %s639_s24 }
 0x15d   : > { %p490_p7 = pnand %p489_p4, %p598_p5 }
 0x15e   : > { %p495_p11 = por %p494_p10, %p493_p9 }
 0x15f   : > { %p491_p8 = pneg %p490_p7 }
 0x160   : > { %p497_p13 = por %p496_p12, %p495_p11 }
 0x162   : > { %p498_p0 = pnand %p497_p13, %p491_p8 }
 0x164   : > { %501 = shalt.err (!%p498_p0)
}
 0x165   : > { %428 = dma.vmem_to_hbm [thread:$0]  (%p598_p5), %s641_s17, 128, %s639_s24, %s342_s25  }
 0x166 PF: > { %p434_p1 = scmp.ge.s32.totalorder %s536_s15, 2  ;;  %s367_s8 = sand.u32 1, %s524_s12  }
 0x167   : > { %s368_s9 = scalar_lea.sflag [#allocation3], %s367_s8 }
 0x168   : > { %p431_p2 = pnand %p434_p1, %p602_p6 }
 0x16a   : > { %519 = dma.done.wait (!%p431_p2), %s368_s9, 128  }
 0x16b   : > { %521 = vsyncadd (!%p431_p2), %s368_s9, 4294967168  ;;  %p13_p3 = scmp.ge.s32.totalorder %s585_s18, 4   ;;  %s687_s12 = smov %s528_s13 }
 0x16c   : > { %s688_s13 = smov %s532_s14  ;;  %s689_s14 = smov %s596_s21 }
 0x16d   : > { %s690_s15 = smov %s585_s18  ;;  %15 = sbr.rel (!%p13_p3) target bundleno = 3 (0x3), region = 68 }
 0x174   :  { %373 = vsyncpa [#allocation3], 1 }
 0x175   :  { %375 = vsyncpa [#allocation3 + $0x1], 1 }

</bundles_post_ra>
